<compile_context>
chip_gen: v7x
topology: tpu7x:2x2x1
jax: 0.10.0
libtpu: 0.0.40
codegen_flags: <defaults>
</compile_context>

<pallas_src>
from math import sqrt

import jax
import jax.numpy as jnp
from jax import lax
from jax.experimental import pallas as pl
from jax.experimental.pallas import tpu as pltpu

_SCORE_MASK = -1.0e30  # finite "-inf": exp underflows to exactly 0, no NaN on empty rows


# ----------------------------- Pallas kernel ---------------------------------

def _attention_kernel(q_ref, xunf_ref, pmem_ref, mem_ref, len_ref,
                      wq_ref, wloc_ref, v_ref,
                      ctx_ref, attw_ref):
    """One batch block (B_blk rows) per grid step.

    q_ref    : (B_blk, Drnn)  f32   query
    xunf_ref : (B_blk, T, Kp) bf16  im2col slab of attention_weights_cat
    pmem_ref : (B_blk, T, A)  bf16  processed_memory
    mem_ref  : (B_blk, T, E)  bf16  memory (encoder outputs)
    len_ref  : (B_blk, 1)     i32   valid lengths (0 => fully masked / padded row)
    wq_ref   : (Drnn, A)      f32   query_layer weight (in, out layout)
    wloc_ref : (Kp, A)        f32   conv1d + location_dense folded weight (rows = 2k+c)
    v_ref    : (1, A)         f32   v weight
    ctx_ref  : (B_blk, E)     f32   attention_context out
    attw_ref : (B_blk, T)     f32   attention_weights out
    """
    Bb, T, A = pmem_ref.shape
    Kp = wloc_ref.shape[0]

    # --- query projection (MXU): (Bb, Drnn) @ (Drnn, A) -> (Bb, A) ---
    pq = jnp.dot(q_ref[...], wq_ref[...], preferred_element_type=jnp.float32)

    # --- location features (MXU): one (Bb*T, Kp) @ (Kp, A) matmul ---
    xu = xunf_ref[...].astype(jnp.float32).reshape(Bb * T, Kp)
    loc = jnp.dot(xu, wloc_ref[...], preferred_element_type=jnp.float32)
    loc = loc.reshape(Bb, T, A)

    # --- energies = v . tanh(pq + loc + processed_memory) -> (Bb, T) ---
    h = jnp.tanh(pq[:, None, :] + loc + pmem_ref[...].astype(jnp.float32))
    v_row = v_ref[...].astype(jnp.float32).reshape(1, 1, A)
    e = jnp.sum(h * v_row, axis=-1)                                   # (Bb, T)

    # --- mask from lengths (matches masked_fill_(mask, -inf) for valid rows) ---
    tids = lax.broadcasted_iota(jnp.int32, (Bb, T), 1)
    e = jnp.where(tids >= len_ref[...], _SCORE_MASK, e)

    # --- softmax over T (lane axis) ---
    e_max = jnp.max(e, axis=-1, keepdims=True)
    p = jnp.exp(e - e_max)
    w = p / jnp.sum(p, axis=-1, keepdims=True)                        # (Bb, T) f32
    attw_ref[...] = w.astype(attw_ref.dtype)

    # --- context (MXU): per-row (1,T) @ (T,E) -> (Bb, E), bf16 in / f32 acc ---
    w_bf = w.astype(mem_ref.dtype)
    rows = []
    for b in range(Bb):                                               # Bb static & small
        rows.append(jnp.dot(w_bf[b:b + 1, :], mem_ref[b],
                            preferred_element_type=jnp.float32))
    ctx_ref[...] = jnp.concatenate(rows, axis=0).astype(ctx_ref.dtype)


# ------------------------------- wrapper --------------------------------------

def attention_forward(params, query, memory, processed_memory,
                      attention_weights_cat, lengths=None, block_b=8):
    """query (B,Drnn), memory (B,T,E), processed_memory (B,T,A),
    attention_weights_cat (B,2,T), lengths (B,) int: number of valid timesteps
    (positions >= length are masked; None => no masking).  For a standard
    "pad at the end" boolean mask, lengths = T - mask.sum(-1).
    Returns (attention_context (B,E), attention_weights (B,T))."""
    B, T, E = memory.shape
    A = processed_memory.shape[-1]
    Drnn = query.shape[-1]
    wq, wloc, v = params["wq"], params["wloc_flat"], params["v"]
    K = params["conv_w"].shape[-1]          # static (shape of an array leaf)
    Kp = wloc.shape[0]                      # 2K rounded up to a multiple of 8
    pad = (K - 1) // 2

    # ---- per-call layout glue (only the small tensors are touched in f32) ----
    # im2col slab: x_unfold[b, t, 2k+c] = awc_padded[b, c, t+k]  (bf16, lane dim = Kp)
    awc = jnp.swapaxes(attention_weights_cat, 1, 2).astype(jnp.bfloat16)   # (B, T, 2)
    awc = jnp.pad(awc, ((0, 0), (pad, pad), (0, 0)))                        # (B, T+2p, 2)
    x_unfold = jnp.concatenate([awc[:, k:k + T, :] for k in range(K)], axis=-1)
    if Kp > 2 * K:
        x_unfold = jnp.pad(x_unfold, ((0, 0), (0, 0), (0, Kp - 2 * K)))     # (B, T, Kp)

    if lengths is None:
        lengths = jnp.full((B,), T, dtype=jnp.int32)
    lens = lengths.astype(jnp.int32).reshape(B, 1)

    q = query.astype(jnp.float32)
    mem = memory.astype(jnp.bfloat16)              # big streams in bf16 (halves DMA)
    pmem = processed_memory.astype(jnp.bfloat16)

    # ---- batch blocking (amortize per-grid-step overhead) ----
    B_blk = B if B <= block_b else block_b
    B_pad = ((B + B_blk - 1) // B_blk) * B_blk
    if B_pad != B:
        pb = B_pad - B
        q = jnp.pad(q, ((0, pb), (0, 0)))
        x_unfold = jnp.pad(x_unfold, ((0, pb), (0, 0), (0, 0)))
        pmem = jnp.pad(pmem, ((0, pb), (0, 0), (0, 0)))
        mem = jnp.pad(mem, ((0, pb), (0, 0), (0, 0)))
        lens = jnp.pad(lens, ((0, pb), (0, 0)))    # length 0 -> fully masked, no NaN

    # ---- explicit VMEM budget (v7x: 64 MiB physical / 32 MiB scoped default) ----
    bytes_blk_in = B_blk * (Drnn * 4 + T * Kp * 2 + T * A * 2 + T * E * 2 + 4)
    bytes_blk_out = B_blk * (E * 4 + T * 4)
    bytes_weights = (Drnn * A + Kp * A + A) * 4
    bytes_tmp = 4 * B_blk * T * A * 4
    vmem_limit = int(min(64 * 2 ** 20,
                         max(32 * 2 ** 20,
                             2 * (bytes_blk_in + bytes_blk_out) + bytes_weights + bytes_tmp)))

    ctx, attw = pl.pallas_call(
        _attention_kernel,
        out_shape=(jax.ShapeDtypeStruct((B_pad, E), jnp.float32),
                   jax.ShapeDtypeStruct((B_pad, T), jnp.float32)),
        grid=(B_pad // B_blk,),
        in_specs=[
            pl.BlockSpec((B_blk, Drnn),  lambda i: (i, 0)),       # query
            pl.BlockSpec((B_blk, T, Kp), lambda i: (i, 0, 0)),    # im2col slab
            pl.BlockSpec((B_blk, T, A),  lambda i: (i, 0, 0)),    # processed_memory
            pl.BlockSpec((B_blk, T, E),  lambda i: (i, 0, 0)),    # memory
            pl.BlockSpec((B_blk, 1),     lambda i: (i, 0)),       # lengths
            pl.BlockSpec((Drnn, A),      lambda i: (0, 0)),       # Wq (resident)
            pl.BlockSpec((Kp, A),        lambda i: (0, 0)),       # folded location weight
            pl.BlockSpec((1, A),         lambda i: (0, 0)),       # v
        ],
        out_specs=(
            pl.BlockSpec((B_blk, E), lambda i: (i, 0)),           # attention_context
            pl.BlockSpec((B_blk, T), lambda i: (i, 0)),           # attention_weights
        ),
        compiler_params=pltpu.CompilerParams(
            dimension_semantics=("parallel",),                    # megacore on v7x
            vmem_limit_bytes=vmem_limit),
    )(q, x_unfold, pmem, mem, lens, wq, wloc, v)

    return ctx[:B], attw[:B]


# --------------------------- params / reference --------------------------------

def init_attention_params(key, attention_rnn_dim, embedding_dim, attention_dim,
                          attention_location_n_filters, attention_location_kernel_size):
    assert attention_location_kernel_size % 2 == 1
    kq, kc, kd, kv = jax.random.split(key, 4)
    gain_tanh = 5.0 / 3.0

    def xavier(k, shape, fan_in, fan_out, gain=1.0):
        bound = gain * sqrt(6.0 / (fan_in + fan_out))
        return jax.random.uniform(k, shape, jnp.float32, -bound, bound)

    F, K = attention_location_n_filters, attention_location_kernel_size
    A = attention_dim
    # Stored directly in the (in, out) layout the kernel consumes.
    wq = xavier(kq, (attention_rnn_dim, A), attention_rnn_dim, A, gain_tanh)  # query_layer
    conv_w = xavier(kc, (F, 2, K), 2 * K, F * K)                              # ConvNorm
    dense_w = xavier(kd, (F, A), F, A, gain_tanh)                             # location_dense
    v = xavier(kv, (1, A), A, 1)                                              # v

    # Fold conv (F,2,K) with the following dense (F,A) into a lane/sublane-aligned
    # (2K_pad, A) matrix.  Valid because LocationLayer uses bias=False on both layers
    # and has no nonlinearity between them.
    wloc = jnp.einsum('fck,fa->kca', conv_w, dense_w, precision=lax.Precision.HIGHEST)
    two_k = 2 * K
    kp = ((two_k + 7) // 8) * 8
    wloc_flat = wloc.reshape(two_k, A)
    if kp != two_k:
        wloc_flat = jnp.pad(wloc_flat, ((0, kp - two_k), (0, 0)))

    # NOTE: Attention.memory_layer is not used in forward() (processed_memory is an
    # input), so it has no kernel counterpart.
    return {"wq": wq, "v": v, "wloc_flat": wloc_flat,
            "conv_w": conv_w, "dense_w": dense_w}


def attention_reference(params, query, memory, processed_memory,
                        attention_weights_cat, lengths):
    """Pure-JAX f32 reference of the PyTorch forward (un-folded weights).  The big
    streams are quantized to bf16 exactly as the kernel's inputs are, so the
    comparison isolates kernel arithmetic."""
    hp = lax.Precision.HIGHEST
    f32 = jnp.float32
    memory = memory.astype(jnp.bfloat16).astype(f32)
    processed_memory = processed_memory.astype(jnp.bfloat16).astype(f32)
    awc = attention_weights_cat.astype(jnp.bfloat16).astype(f32)

    K = params["conv_w"].shape[-1]
    pad = (K - 1) // 2
    T = memory.shape[1]
    pq = jnp.dot(query.astype(f32), params["wq"], precision=hp)               # (B, A)
    conv = lax.conv_general_dilated(
        awc, params["conv_w"], window_strides=(1,), padding=[(pad, pad)],
        dimension_numbers=("NCH", "OIH", "NCH"), precision=hp)                # (B, F, T)
    loc = jnp.einsum('bft,fa->bta', conv, params["dense_w"], precision=hp)    # (B, T, A)
    h = jnp.tanh(pq[:, None, :] + loc + processed_memory)
    e = jnp.einsum('bta,a->bt', h, params["v"][0], precision=hp)              # (B, T)
    mask = jnp.arange(T)[None, :] >= lengths[:, None]
    e = jnp.where(mask, -jnp.inf, e)
    w = jax.nn.softmax(e, axis=1)
    ctx = jnp.einsum('bt,bte->be', w, memory, precision=hp)
    return ctx, w


# --------------------------------- test ----------------------------------------

if __name__ == "__main__":
    # Small, TPU-friendly shapes consistent with Tacotron2's Attention.
    B, T = 2, 64
    attention_rnn_dim, embedding_dim, attention_dim = 128, 128, 128
    n_filters, kernel_size = 16, 5

    key = jax.random.PRNGKey(0)
    kp, kq, km, kw, ka = jax.random.split(key, 5)
    params = init_attention_params(kp, attention_rnn_dim, embedding_dim,
                                   attention_dim, n_filters, kernel_size)

    query = jax.random.normal(kq, (B, attention_rnn_dim), jnp.float32)
    memory = jax.random.normal(km, (B, T, embedding_dim), jnp.float32)
    w_mem = jax.random.normal(kw, (embedding_dim, attention_dim), jnp.float32) * 0.05
    processed_memory = jnp.einsum('bte,ea->bta', memory, w_mem)
    prev = jax.nn.softmax(jax.random.normal(ka, (B, T)), axis=-1)
    cum = jnp.cumsum(prev, axis=-1)
    attention_weights_cat = jnp.stack([prev, cum], axis=1)                    # (B, 2, T)
    # Second batch element has its last 16 frames padded (mask == positions >= length).
    lengths = jnp.array([T, T - 16], dtype=jnp.int32)

    fwd = jax.jit(attention_forward)
    ctx, attw = fwd(params, query, memory, processed_memory,
                    attention_weights_cat, lengths)
    jax.block_until_ready((ctx, attw))

    # Validate against the pure-JAX reference of the PyTorch forward.
    ctx_ref, attw_ref = attention_reference(params, query, memory, processed_memory,
                                            attention_weights_cat, lengths)
    assert ctx.shape == (B, embedding_dim) and attw.shape == (B, T)
    assert bool(jnp.allclose(jnp.sum(attw, axis=-1), 1.0, atol=1e-3))
    assert bool(jnp.all(attw[1, T - 16:] == 0.0))          # padded positions get 0 weight
    assert bool(jnp.allclose(attw, attw_ref, atol=5e-3, rtol=5e-3))
    assert bool(jnp.allclose(ctx, ctx_ref, atol=2e-2, rtol=2e-2))
    print("KERNEL_OK")
</pallas_src>

<mosaic_0001>
module attributes {stable_mosaic.version = 11 : i64} {
  func.func @_attention_kernel(%arg0: i32, %arg1: memref<2x128xf32, #tpu.memory_space<vmem>>, %arg2: memref<2x64x16xbf16, #tpu.memory_space<vmem>>, %arg3: memref<2x64x128xbf16, #tpu.memory_space<vmem>>, %arg4: memref<2x64x128xbf16, #tpu.memory_space<vmem>>, %arg5: memref<2x1xi32, #tpu.memory_space<vmem>>, %arg6: memref<128x128xf32, #tpu.memory_space<vmem>>, %arg7: memref<16x128xf32, #tpu.memory_space<vmem>>, %arg8: memref<1x128xf32, #tpu.memory_space<vmem>>, %arg9: memref<2x128xf32, #tpu.memory_space<vmem>>, %arg10: memref<2x64xf32, #tpu.memory_space<vmem>>) attributes {dimension_semantics = [#tpu.dimension_semantics<parallel>], iteration_bounds = array<i64: 1>, scalar_prefetch = 0 : i64, scratch_operands = 0 : i64, tpu.core_type = #tpu.core_type<tc>, window_params = [{transform_indices = @transform_0, window_bounds = array<i64: 2, 128>}, {transform_indices = @transform_1, window_bounds = array<i64: 2, 64, 16>}, {transform_indices = @transform_2, window_bounds = array<i64: 2, 64, 128>}, {transform_indices = @transform_3, window_bounds = array<i64: 2, 64, 128>}, {transform_indices = @transform_4, window_bounds = array<i64: 2, 1>}, {pipeline_mode = #tpu.pipeline_mode<synchronous>, transform_indices = @transform_5, window_bounds = array<i64: 128, 128>}, {pipeline_mode = #tpu.pipeline_mode<synchronous>, transform_indices = @transform_6, window_bounds = array<i64: 16, 128>}, {pipeline_mode = #tpu.pipeline_mode<synchronous>, transform_indices = @transform_7, window_bounds = array<i64: 1, 128>}, {transform_indices = @transform_8, window_bounds = array<i64: 2, 128>}, {transform_indices = @transform_9, window_bounds = array<i64: 2, 64>}]} {
    %c0 = arith.constant 0 : index
    %c0_0 = arith.constant 0 : index
    %0 = vector.load %arg1[%c0, %c0_0] : memref<2x128xf32, #tpu.memory_space<vmem>>, vector<2x128xf32>
    %c0_1 = arith.constant 0 : index
    %c0_2 = arith.constant 0 : index
    %1 = vector.load %arg6[%c0_1, %c0_2] : memref<128x128xf32, #tpu.memory_space<vmem>>, vector<128x128xf32>
    %cst = arith.constant dense<0.000000e+00> : vector<2x128xf32>
    %2 = tpu.matmul %0, %1, %cst {dimension_numbers = #tpu.dot_dimension_numbers<[1], [0], [0], [1], [0, 0, 1, 1], [], []>} : vector<2x128xf32>, vector<128x128xf32>, vector<2x128xf32> -> vector<2x128xf32>
    %c0_3 = arith.constant 0 : index
    %c0_4 = arith.constant 0 : index
    %c0_5 = arith.constant 0 : index
    %3 = vector.load %arg2[%c0_3, %c0_4, %c0_5] : memref<2x64x16xbf16, #tpu.memory_space<vmem>>, vector<2x64x16xbf16>
    %4 = arith.extf %3 : vector<2x64x16xbf16> to vector<2x64x16xf32>
    %5 = vector.shape_cast %4 : vector<2x64x16xf32> to vector<128x16xf32>
    %c0_6 = arith.constant 0 : index
    %c0_7 = arith.constant 0 : index
    %6 = vector.load %arg7[%c0_6, %c0_7] : memref<16x128xf32, #tpu.memory_space<vmem>>, vector<16x128xf32>
    %cst_8 = arith.constant dense<0.000000e+00> : vector<128x128xf32>
    %7 = tpu.matmul %5, %6, %cst_8 {dimension_numbers = #tpu.dot_dimension_numbers<[1], [0], [0], [1], [0, 0, 1, 1], [], []>} : vector<128x16xf32>, vector<16x128xf32>, vector<128x128xf32> -> vector<128x128xf32>
    %8 = vector.shape_cast %7 : vector<128x128xf32> to vector<2x64x128xf32>
    %9 = vector.shape_cast %2 : vector<2x128xf32> to vector<2x1x128xf32>
    %10 = vector.broadcast %9 : vector<2x1x128xf32> to vector<2x64x128xf32>
    %11 = arith.addf %10, %8 : vector<2x64x128xf32>
    %c0_9 = arith.constant 0 : index
    %c0_10 = arith.constant 0 : index
    %c0_11 = arith.constant 0 : index
    %12 = vector.load %arg3[%c0_9, %c0_10, %c0_11] : memref<2x64x128xbf16, #tpu.memory_space<vmem>>, vector<2x64x128xbf16>
    %13 = arith.extf %12 : vector<2x64x128xbf16> to vector<2x64x128xf32>
    %14 = arith.addf %11, %13 : vector<2x64x128xf32>
    %15 = math.tanh %14 : vector<2x64x128xf32>
    %c0_12 = arith.constant 0 : index
    %c0_13 = arith.constant 0 : index
    %16 = vector.load %arg8[%c0_12, %c0_13] : memref<1x128xf32, #tpu.memory_space<vmem>>, vector<1x128xf32>
    %17 = vector.shape_cast %16 : vector<1x128xf32> to vector<1x1x128xf32>
    %18 = vector.broadcast %17 : vector<1x1x128xf32> to vector<2x64x128xf32>
    %19 = arith.mulf %15, %18 : vector<2x64x128xf32>
    %cst_14 = arith.constant dense<0.000000e+00> : vector<2x64xf32>
    %20 = vector.multi_reduction <add>, %19, %cst_14 [2] : vector<2x64x128xf32> to vector<2x64xf32>
    %21 = tpu.iota {dimensions = array<i32: 1>} : vector<2x64xi32>
    %c0_15 = arith.constant 0 : index
    %c0_16 = arith.constant 0 : index
    %22 = vector.load %arg5[%c0_15, %c0_16] : memref<2x1xi32, #tpu.memory_space<vmem>>, vector<2x1xi32>
    %23 = vector.broadcast %22 : vector<2x1xi32> to vector<2x64xi32>
    %24 = arith.cmpi sge, %21, %23 : vector<2x64xi32>
    %cst_17 = arith.constant -1.000000e+30 : f32
    %25 = vector.broadcast %cst_17 : f32 to vector<2x64xf32>
    %26 = arith.select %24, %25, %20 : vector<2x64xi1>, vector<2x64xf32>
    %cst_18 = arith.constant dense<0xFF800000> : vector<2xf32>
    %27 = vector.multi_reduction <maximumf>, %26, %cst_18 [1] : vector<2x64xf32> to vector<2xf32>
    %28 = vector.shape_cast %27 : vector<2xf32> to vector<2x1xf32>
    %29 = vector.broadcast %28 : vector<2x1xf32> to vector<2x64xf32>
    %30 = arith.subf %26, %29 : vector<2x64xf32>
    %31 = math.exp %30 : vector<2x64xf32>
    %cst_19 = arith.constant dense<0.000000e+00> : vector<2xf32>
    %32 = vector.multi_reduction <add>, %31, %cst_19 [1] : vector<2x64xf32> to vector<2xf32>
    %33 = vector.shape_cast %32 : vector<2xf32> to vector<2x1xf32>
    %34 = vector.broadcast %33 : vector<2x1xf32> to vector<2x64xf32>
    %35 = arith.divf %31, %34 : vector<2x64xf32>
    %c0_20 = arith.constant 0 : index
    %c0_21 = arith.constant 0 : index
    %36 = vector.load %arg10[%c0_20, %c0_21] : memref<2x64xf32, #tpu.memory_space<vmem>>, vector<2x64xf32>
    tpu.vector_store %arg10[%c0_20, %c0_21], %35 {strides = array<i32>} : memref<2x64xf32, #tpu.memory_space<vmem>>, vector<2x64xf32>,
    %37 = arith.truncf %35 : vector<2x64xf32> to vector<2x64xbf16>
    %38 = vector.extract_strided_slice %37 {offsets = [0, 0], sizes = [1, 64], strides = [1, 1]} : vector<2x64xbf16> to vector<1x64xbf16>
    %c0_22 = arith.constant 0 : index
    %c0_23 = arith.constant 0 : index
    %c0_24 = arith.constant 0 : index
    %39 = vector.load %arg4[%c0_22, %c0_23, %c0_24] : memref<2x64x128xbf16, #tpu.memory_space<vmem>>, vector<1x64x128xbf16>
    %40 = vector.shape_cast %39 : vector<1x64x128xbf16> to vector<64x128xbf16>
    %cst_25 = arith.constant dense<0.000000e+00> : vector<1x128xf32>
    %41 = tpu.matmul %38, %40, %cst_25 {dimension_numbers = #tpu.dot_dimension_numbers<[1], [0], [0], [1], [0, 0, 1, 1], [], []>} : vector<1x64xbf16>, vector<64x128xbf16>, vector<1x128xf32> -> vector<1x128xf32>
    %42 = vector.extract_strided_slice %37 {offsets = [1, 0], sizes = [1, 64], strides = [1, 1]} : vector<2x64xbf16> to vector<1x64xbf16>
    %c1 = arith.constant 1 : index
    %c0_26 = arith.constant 0 : index
    %c0_27 = arith.constant 0 : index
    %43 = vector.load %arg4[%c1, %c0_26, %c0_27] : memref<2x64x128xbf16, #tpu.memory_space<vmem>>, vector<1x64x128xbf16>
    %44 = vector.shape_cast %43 : vector<1x64x128xbf16> to vector<64x128xbf16>
    %cst_28 = arith.constant dense<0.000000e+00> : vector<1x128xf32>
    %45 = tpu.matmul %42, %44, %cst_28 {dimension_numbers = #tpu.dot_dimension_numbers<[1], [0], [0], [1], [0, 0, 1, 1], [], []>} : vector<1x64xbf16>, vector<64x128xbf16>, vector<1x128xf32> -> vector<1x128xf32>
    %46 = tpu.concatenate %41, %45 in 0 : vector<1x128xf32>, vector<1x128xf32> -> vector<2x128xf32>
    %c0_29 = arith.constant 0 : index
    %c0_30 = arith.constant 0 : index
    %47 = vector.load %arg9[%c0_29, %c0_30] : memref<2x128xf32, #tpu.memory_space<vmem>>, vector<2x128xf32>
    tpu.vector_store %arg9[%c0_29, %c0_30], %46 {strides = array<i32>} : memref<2x128xf32, #tpu.memory_space<vmem>>, vector<2x128xf32>,
    return
  }
  func.func @transform_0(%arg0: i32) -> (i32, i32) {
    %c0_i32 = arith.constant 0 : i32
    %c0_i32_0 = arith.constant 0 : i32
    return %arg0, %c0_i32 : i32, i32
  }
  func.func @transform_1(%arg0: i32) -> (i32, i32, i32) {
    %c0_i32 = arith.constant 0 : i32
    %c0_i32_0 = arith.constant 0 : i32
    %c0_i32_1 = arith.constant 0 : i32
    return %arg0, %c0_i32, %c0_i32_0 : i32, i32, i32
  }
  func.func @transform_2(%arg0: i32) -> (i32, i32, i32) {
    %c0_i32 = arith.constant 0 : i32
    %c0_i32_0 = arith.constant 0 : i32
    %c0_i32_1 = arith.constant 0 : i32
    return %arg0, %c0_i32, %c0_i32_0 : i32, i32, i32
  }
  func.func @transform_3(%arg0: i32) -> (i32, i32, i32) {
    %c0_i32 = arith.constant 0 : i32
    %c0_i32_0 = arith.constant 0 : i32
    %c0_i32_1 = arith.constant 0 : i32
    return %arg0, %c0_i32, %c0_i32_0 : i32, i32, i32
  }
  func.func @transform_4(%arg0: i32) -> (i32, i32) {
    %c0_i32 = arith.constant 0 : i32
    %c0_i32_0 = arith.constant 0 : i32
    return %arg0, %c0_i32 : i32, i32
  }
  func.func @transform_5(%arg0: i32) -> (i32, i32) {
    %c0_i32 = arith.constant 0 : i32
    %c0_i32_0 = arith.constant 0 : i32
    %c0_i32_1 = arith.constant 0 : i32
    return %c0_i32, %c0_i32_0 : i32, i32
  }
  func.func @transform_6(%arg0: i32) -> (i32, i32) {
    %c0_i32 = arith.constant 0 : i32
    %c0_i32_0 = arith.constant 0 : i32
    %c0_i32_1 = arith.constant 0 : i32
    return %c0_i32, %c0_i32_0 : i32, i32
  }
  func.func @transform_7(%arg0: i32) -> (i32, i32) {
    %c0_i32 = arith.constant 0 : i32
    %c0_i32_0 = arith.constant 0 : i32
    %c0_i32_1 = arith.constant 0 : i32
    return %c0_i32, %c0_i32_0 : i32, i32
  }
  func.func @transform_8(%arg0: i32) -> (i32, i32) {
    %c0_i32 = arith.constant 0 : i32
    %c0_i32_0 = arith.constant 0 : i32
    return %arg0, %c0_i32 : i32, i32
  }
  func.func @transform_9(%arg0: i32) -> (i32, i32) {
    %c0_i32 = arith.constant 0 : i32
    %c0_i32_0 = arith.constant 0 : i32
    return %arg0, %c0_i32 : i32, i32
  }
}

</mosaic_0001>

<bundles_post_ra>
// kernel: attention_forward.1
= control target key start
LH: loop header
LB: loop body
LE: loop exit
PB: predicated region body
PF: predicated region fallthrough
CT: control target
= control target key end

     0   :  { %15 = vsyncpa [#allocation3], 0  ;;  %v1211_v3 = vmov 0.0|0.0   ;;  %vm155_vm0 = vcmask 130048   ;;  %vm1212_vm1 = vmmov 0   ;;  %v1213_v10 = vmov 0.0   ;;  %s1525_s0 = inlined_call_operand.vmem [shape: f32[2,128], index: 0, kind: input, shape index: {}]   ;;  %s1526_s1 = inlined_call_operand.vmem [shape: bf16[2,64,16], index: 1, kind: input, shape index: {}]   ;;  %s1527_s2 = inlined_call_operand.vmem [shape: bf16[2,64,128], index: 2, kind: input, shape index: {}]   ;;  %s1528_s3 = inlined_call_operand.vmem [shape: bf16[2,64,128], index: 3, kind: input, shape index: {}]   ;;  %s1529_s4 = inlined_call_operand.vmem [shape: s32[2,1], index: 4, kind: input, shape index: {}]   ;;  %s1530_s5 = inlined_call_operand.vmem [shape: f32[128,128], index: 5, kind: input, shape index: {}]   ;;  %s1531_s6 = inlined_call_operand.vmem [shape: f32[16,128], index: 6, kind: input, shape index: {}]   ;;  %s1532_s7 = inlined_call_operand.vmem [shape: f32[1,128], index: 7, kind: input, shape index: {}]   ;;  %s1533_s8 = inlined_call_operand.hbm [shape: f32[2,128], index: 8, kind: output, shape index: {0}]   ;;  %s1534_s9 = inlined_call_operand.hbm [shape: f32[2,64], index: 9, kind: output, shape index: {1}]  }
   0x1   :  { %v35_v0 = vld [vmem:[%s1530_s5] sm:$0xff]  ;;  %v36_v1 = vld [vmem:[%s1530_s5 + $0x8] sm:$0xff]  ;;  %v37_v2 = vld [vmem:[%s1530_s5 + $0x10] sm:$0xff]  ;;  %1083 = vmatprep.subr.bf16.mxu0 %v1211_v3  ;;  %1028 = vmatprep.mubr.msk.f32.mxu0 %vm1212_vm1, %v1213_v10 }
   0x2   :  { %v1084_v4 = vpack.c.bf16 %v36_v1, %v35_v0  ;;  %v38_v5 = vld [vmem:[%s1530_s5 + $0x18] sm:$0xff]  ;;  %v153_v6 = vld [vmem:[%s1531_s6] sm:$0xff]  ;;  %v154_v7 = vld [vmem:[%s1531_s6 + $0x8] sm:$0xff] }
   0x3   :  { %v1107_v8 = vpack.c.bf16 %v154_v7, %v153_v6  ;;  %v874_v9 = vld [vmem:[%s1526_s1] sm:$0xff]   ;;  %v1087_v11 = vpack.c.bf16 %v38_v5, %v37_v2  ;;  %v937_v13 = vld [vmem:[%s1526_s1 + $0x8] sm:$0xff]   ;;  %v938_v18 = vld [vmem:[%s1526_s1 + $0x10] sm:$0xff]  }
   0x4   :  { %1085 = vmatpush3.bf16.msra.mxu0 %v1084_v4  ;;  %v875_v12 = vunpack.c.l.bf16 %v874_v9  ;;  %v39_v14 = vld [vmem:[%s1530_s5 + $0x20] sm:$0xff]  ;;  %v40_v15 = vld [vmem:[%s1530_s5 + $0x28] sm:$0xff]  ;;  %v876_v16 = vunpack.c.h.bf16 %v874_v9  ;;  %v879_v17 = vunpack.c.l.bf16 %v937_v13  ;;  %v41_v20 = vld [vmem:[%s1530_s5 + $0x30] sm:$0xff]  ;;  %v880_v22 = vunpack.c.h.bf16 %v937_v13 }
   0x5   :  { %1086 = vmatprep.subr.bf16.mxu0 %v1211_v3  ;;  %1108 = vmatprep.subr.bf16.mxu1 %v1107_v8  ;;  %v1090_v19 = vpack.c.bf16 %v40_v15, %v39_v14  ;;  %v42_v21 = vld [vmem:[%s1530_s5 + $0x38] sm:$0xff]  ;;  %v883_v24 = vunpack.c.l.bf16 %v938_v18  ;;  %v43_v25 = vld [vmem:[%s1530_s5 + $0x40] sm:$0xff]  ;;  %v44_v26 = vld [vmem:[%s1530_s5 + $0x48] sm:$0xff]  ;;  %v884_v28 = vunpack.c.h.bf16 %v938_v18 }
   0x6   :  { %1110 = vmatpush3.bf16.msra.mxu1 %v1107_v8  ;;  %1035 = vmatprep.mubr.msk.f32.mxu1 %vm155_vm0, %v875_v12  ;;  %v939_v23 = vld [vmem:[%s1526_s1 + $0x18] sm:$0xff]   ;;  %v1093_v27 = vpack.c.bf16 %v42_v21, %v41_v20  ;;  %v940_v30 = vld [vmem:[%s1526_s1 + $0x20] sm:$0xff]  }
   0x7   :  { %1059 = vmatprep.subr.bf16.mxu1 %v1213_v10  ;;  %v887_v29 = vunpack.c.l.bf16 %v939_v23 }
   0x8   :  { %1088 = vmatpush3.bf16.msra.mxu0 %v1087_v11 }
   0x9   :  { %1089 = vmatprep.subr.bf16.mxu0 %v1211_v3  ;;  %1036 = vmatmul.mubr.msk.f32.vlgmr.msra.gmra.mrb[0].mxu1 %vm155_vm0, %v876_v16 }
   0xa   :  { %1038 = vmatprep.mubr.msk.f32.mxu1 %vm155_vm0, %v879_v17 }
   0xc   :  { %1091 = vmatpush3.bf16.msra.mxu0 %v1090_v19 }
   0xd   :  { %1092 = vmatprep.subr.bf16.mxu0 %v1211_v3  ;;  %1039 = vmatmul.mubr.msk.f32.gmra.mrb[2].mxu1 %vm155_vm0, %v880_v22 }
   0xe   :  { %1041 = vmatprep.mubr.msk.f32.mxu1 %vm155_vm0, %v883_v24 }
   0xf   :  { %16 = vsyncpa [#allocation5], 0  ;;  %v1096_v31 = vpack.c.bf16 %v44_v26, %v43_v25  ;;  %v45_v32 = vld [vmem:[%s1530_s5 + $0x50] sm:$0xff]  ;;  %v46_v33 = vld [vmem:[%s1530_s5 + $0x58] sm:$0xff]  ;;  %v888_v34 = vunpack.c.h.bf16 %v939_v23  ;;  %v891_v35 = vunpack.c.l.bf16 %v940_v30  ;;  %v892_v40 = vunpack.c.h.bf16 %v940_v30  ;;  %s1216_s24 = smov [#allocation4]  }
  0x10   :  { %1094 = vmatpush3.bf16.msra.mxu0 %v1093_v27  ;;  %v941_v36 = vld [vmem:[%s1526_s1 + $0x28] sm:$0xff]   ;;  %v1099_v37 = vpack.c.bf16 %v46_v33, %v45_v32  ;;  %v47_v38 = vld [vmem:[%s1530_s5 + $0x60] sm:$0xff]  ;;  %v942_v42 = vld [vmem:[%s1526_s1 + $0x30] sm:$0xff]   ;;  %v1214_v54 = vmov 0   ;;  %v1215_v63 = vmov 1966171168   ;;  %v353_v1 = vlaneseq }
  0x11   :  { %1095 = vmatprep.subr.bf16.mxu0 %v1211_v3  ;;  %1042 = vmatmul.mubr.msk.f32.gmra.mrb[4].mxu1 %vm155_vm0, %v884_v28  ;;  %v48_v39 = vld [vmem:[%s1530_s5 + $0x68] sm:$0xff]  ;;  %v895_v41 = vunpack.c.l.bf16 %v941_v36  ;;  %v49_v44 = vld [vmem:[%s1530_s5 + $0x70] sm:$0xff]  ;;  %v50_v45 = vld [vmem:[%s1530_s5 + $0x78] sm:$0xff]  ;;  %v896_v46 = vunpack.c.h.bf16 %v941_v36  ;;  %v899_v47 = vunpack.c.l.bf16 %v942_v42  ;;  %v900_v50 = vunpack.c.h.bf16 %v942_v42  ;;  %s826_s6 = sshll.u32 %s1216_s24, 4  ;;  %s827_s6 = int_to_ptr.vmem [resolvable:$true] %s826_s6 }
  0x12   :  { %1044 = vmatprep.mubr.msk.f32.mxu1 %vm155_vm0, %v887_v29  ;;  %v1102_v43 = vpack.c.bf16 %v48_v39, %v47_v38  ;;  %v943_v48 = vld [vmem:[%s1526_s1 + $0x38] sm:$0xff]   ;;  %v1105_v49 = vpack.c.bf16 %v50_v45, %v49_v44  ;;  %v34_v52 = vld [vmem:[%s1525_s0] sm:$0x3]  ;;  %1118 = vset.pattern.permute.xlu0 %v1214_v54  ;;  %v351_v0 = vunpack.c.l.s4 %v1215_v63  ;;  %v1382_v5 = vshrl.u32 %v353_v1, 7  ;;  %s1163_s25 = scalar_lea.vmem %s827_s6, 32  ;;  %p1168_p1 = scmp.lt.s32.totalorder %s827_s6, %s827_s6 }
  0x13   :  { %v903_v51 = vunpack.c.l.bf16 %v943_v48  ;;  %v904_v53 = vunpack.c.h.bf16 %v943_v48  ;;  %v947_v19 = vld [vmem:[%s1527_s2 + $0x20] sm:$0xff]   ;;  %vm549_vm2 = vcmask 130112   ;;  %vm556_vm3 = vcmask 195712   ;;  %p1164_p0 = scmp.ne.s32.totalorder %s827_s6, %s1163_s25  ;;  %p1169_p2 = scmp.lt.s32.totalorder %s1163_s25, %s1163_s25 }
  0x14   :  { %1097 = vmatpush3.bf16.msra.mxu0 %v1096_v31  ;;  %v352_v4 = vunpack.c.0.s8 %v351_v0  ;;  %v374_v14 = vsub.s32 0, %v1382_v5  ;;  %v924_v23 = vunpack.c.h.bf16 %v947_v19  ;;  %v923_v24 = vunpack.c.l.bf16 %v947_v19  ;;  %v945_v0 = vld [vmem:[%s1527_s2 + $0x10] sm:$0xff]  }
  0x15   :  { %1098 = vmatprep.subr.bf16.mxu0 %v1211_v3  ;;  %1045 = vmatmul.mubr.msk.f32.gmra.mrb[6].mxu1 %vm155_vm0, %v888_v34  ;;  %vm563_vm4 = vcmask 261312   ;;  %vm570_vm5 = vcmask 326912   ;;  %vm577_vm6 = vcmask 392512   ;;  %vm584_vm7 = vcmask 458112   ;;  %p1170_p3 = por %p1169_p2, %p1168_p1 }
  0x16   :  { %1047 = vmatprep.mubr.msk.f32.mxu1 %vm155_vm0, %v891_v35  ;;  %v355_v8 = vsub.s32 %v352_v4, %v1382_v5  ;;  %v948_v35 = vld [vmem:[%s1527_s2 + $0x28] sm:$0xff]   ;;  %vm591_vm8 = vcmask 523712   ;;  %vm632_vm9 = vcmask 1041409   ;;  %vm636_vm10 = vcmask 517120  }
  0x17   :  { %v927_v44 = vunpack.c.l.bf16 %v948_v35  ;;  %v928_v48 = vunpack.c.h.bf16 %v948_v35  ;;  %vm682_vm12 = vcmask 523264   ;;  %p1171_p4 = pnand %p1170_p3, %p1164_p0 }
  0x18   :  { %1100 = vmatpush3.bf16.msra.mxu0 %v1099_v37 }
  0x19   :  { %1101 = vmatprep.subr.bf16.mxu0 %v1211_v3  ;;  %1048 = vmatmul.mubr.msk.f32.gmra.mrb[8].mxu1 %vm155_vm0, %v892_v40  ;;  %v906_v40 = vld [vmem:[%s1527_s2] sm:$0xff]  }
  0x1a   :  { %1050 = vmatprep.mubr.msk.f32.mxu1 %vm155_vm0, %v895_v41 }
  0x1c   :  { %1103 = vmatpush3.bf16.msra.mxu0 %v1102_v43 }
  0x1d   :  { %1104 = vmatprep.subr.bf16.mxu0 %v1211_v3  ;;  %1051 = vmatmul.mubr.msk.f32.gmra.mrb[10].mxu1 %vm155_vm0, %v896_v46  ;;  %v907_v46 = vunpack.c.l.bf16 %v906_v40 }
  0x1e   :  { %1053 = vmatprep.mubr.msk.f32.mxu1 %vm155_vm0, %v899_v47  ;;  %v908_v47 = vunpack.c.h.bf16 %v906_v40 }
  0x20   :  { %1106 = vmatpush3.bf16.msra.mxu0 %v1105_v49 }
  0x21   :  { %1054 = vmatmul.mubr.msk.f32.gmra.mrb[12].mxu1 %vm155_vm0, %v900_v50  ;;  %1071 = vmatprep.subr.bf16.mxu0 %v1213_v10  ;;  %v944_v50 = vld [vmem:[%s1527_s2 + $0x8] sm:$0xff]  }
  0x22   :  { %1056 = vmatprep.mubr.msk.f32.mxu1 %vm155_vm0, %v903_v51 }
  0x23   :  { %1029 = vmatmul.mubr.f32.vlgmr.msra.gmra.mrb[0].mxu0 %v34_v52  ;;  %v949_v52 = vld [vmem:[%s1527_s2 + $0x30] sm:$0xff]  }
  0x24   :  { %1079 = vmatprep.mubr.msk.bf16.mxu0 %vm1212_vm1, %v1213_v10 }
  0x25   :  { %1057 = vmatmul.mubr.msk.f32.gmra.mrb[14].mxu1 %vm155_vm0, %v904_v53 }
  0x26   :  { %1067 = vmatprep.mubr.msk.bf16.mxu1 %vm1212_vm1, %v1213_v10 }
  0xdc   :  { %v1037_v55 = vpop.f32.mrb[0].mxu1 }
  0xdd   :  { %v270_v56 = vpop.f32.mrb[1].mxu1 }
  0xe0   :  { %v1040_v57 = vpop.f32.mrb[2].mxu1 }
  0xe1   :  { %v280_v58 = vpop.f32.mrb[3].mxu1 }
  0xe4   :  { %v1043_v59 = vpop.f32.mrb[4].mxu1 }
  0xe5   :  { %v290_v60 = vpop.f32.mrb[5].mxu1 }
  0xe8   :  { %v1046_v61 = vpop.f32.mrb[6].mxu1 }
  0xe9   :  { %v300_v62 = vpop.f32.mrb[7].mxu1 }
  0xec   :  { %v1049_v2 = vpop.f32.mrb[8].mxu1 }
  0xed   :  { %v310_v3 = vpop.f32.mrb[9].mxu1 }
  0xf0   :  { %v1052_v6 = vpop.f32.mrb[10].mxu1 }
  0xf1   :  { %v320_v7 = vpop.f32.mrb[11].mxu1 }
  0xf4   :  { %v1055_v9 = vpop.f32.mrb[12].mxu1 }
  0xf5   :  { %v330_v11 = vpop.f32.mrb[13].mxu1 }
  0xf6   :  { %v117_v12 = vpop.f32.mrb[0].mxu0 }
  0xf7   :  { %v356_v13 = vrot.slane %v117_v12, %v355_v8  ;;  %v1030_v15 = vpop.f32.mrb[1].mxu0 }
  0xf8   :  { %v1058_v16 = vpop.f32.mrb[14].mxu1  ;;  %v916_v15 = vunpack.c.h.bf16 %v945_v0 }
  0xf9   :  { %v357_v17 = vcombine.high %v356_v13, %v356_v13  ;;  %v364_v18 = vrot.slane %v356_v13, %v355_v8  ;;  %v340_v20 = vpop.f32.mrb[15].mxu1 }
  0xfb   :  { %v371_v21 = vrot.slane %v357_v17, %v355_v8  ;;  %v375_v22 = vrot.slane %v364_v18, %v374_v14 }
  0xfd   :  { %v379_v25 = vrot.slane %v371_v21, %v374_v14  ;;  %v1389_v26 = vadd.f32 %v375_v22, %v300_v62  ;;  %v1391_v27 = vadd.f32 %v1046_v61, %v375_v22  ;;  %v382_v28 = vadd.f32 %v375_v22, %v270_v56 }
  0xfe   :  { %v383_v29 = vadd.f32 %v1037_v55, %v375_v22  ;;  %v384_v30 = vadd.f32 %v375_v22, %v280_v58  ;;  %v385_v31 = vadd.f32 %v1040_v57, %v375_v22  ;;  %v386_v32 = vadd.f32 %v375_v22, %v290_v60 }
  0xff   :  { %v391_v33 = vadd.f32 %v1049_v2, %v379_v25  ;;  %v390_v34 = vadd.f32 %v379_v25, %v310_v3  ;;  %v393_v36 = vadd.f32 %v1052_v6, %v379_v25  ;;  %v392_v37 = vadd.f32 %v379_v25, %v320_v7  ;;  %v950_v2 = vld [vmem:[%s1527_s2 + $0x38] sm:$0xff]  }
 0x100   :  { %v395_v38 = vadd.f32 %v1055_v9, %v379_v25  ;;  %v394_v39 = vadd.f32 %v379_v25, %v330_v11  ;;  %v397_v42 = vadd.f32 %v1058_v16, %v379_v25  ;;  %v396_v45 = vadd.f32 %v379_v25, %v340_v20  ;;  %v946_v16 = vld [vmem:[%s1527_s2 + $0x18] sm:$0xff]  }
 0x101   :  { %v438_v41 = vadd.f32 %v923_v24, %v390_v34  ;;  %v439_v43 = vadd.f32 %v924_v23, %v391_v33  ;;  %v440_v49 = vadd.f32 %v927_v44, %v392_v37  ;;  %v387_v51 = vadd.f32 %v1043_v59, %v375_v22  ;;  %v1408_v59 = vld [vmem:[%s1532_s7] ss:$0 sm:$0xff] }
 0x102   :  { %v430_v53 = vadd.f32 %v907_v46, %v382_v28  ;;  %v431_v54 = vadd.f32 %v908_v47, %v383_v29  ;;  %v911_v55 = vunpack.c.l.bf16 %v944_v50  ;;  %v441_v56 = vadd.f32 %v928_v48, %v393_v36 }
 0x103   :  { %1127 = vtanh.f32 %v438_v41  ;;  %v931_v57 = vunpack.c.l.bf16 %v949_v52  ;;  %v912_v60 = vunpack.c.h.bf16 %v944_v50  ;;  %v932_v62 = vunpack.c.h.bf16 %v949_v52 }
 0x104   :  { %1129 = vtanh.f32 %v439_v43  ;;  %v432_v58 = vadd.f32 %v911_v55, %v384_v30  ;;  %v915_v7 = vunpack.c.l.bf16 %v945_v0  ;;  %v935_v9 = vunpack.c.l.bf16 %v950_v2 }
 0x105   :  { %1131 = vtanh.f32 %v440_v49  ;;  %v442_v63 = vadd.f32 %v931_v57, %v394_v39  ;;  %v433_v6 = vadd.f32 %v912_v60, %v385_v31  ;;  %v443_v8 = vadd.f32 %v932_v62, %v395_v38 }
 0x106   :  { %1133 = vtanh.f32 %v430_v53  ;;  %v434_v14 = vadd.f32 %v915_v7, %v386_v32  ;;  %v936_v17 = vunpack.c.h.bf16 %v950_v2  ;;  %v444_v18 = vadd.f32 %v935_v9, %v396_v45 }
 0x107   :  { %1135 = vtanh.f32 %v431_v54  ;;  %v919_v23 = vunpack.c.l.bf16 %v946_v16  ;;  %v435_v24 = vadd.f32 %v916_v15, %v387_v51  ;;  %v920_v32 = vunpack.c.h.bf16 %v946_v16  ;;  %v519_v51 = vld [vmem:[%s1529_s4] sm:$0x3] }
 0x108   :  { %1137 = vtanh.f32 %v441_v56  ;;  %v445_v25 = vadd.f32 %v936_v17, %v397_v42 }
 0x109   :  { %1139 = vtanh.f32 %v432_v58  ;;  %v436_v33 = vadd.f32 %v919_v23, %v1389_v26  ;;  %v437_v38 = vadd.f32 %v920_v32, %v1391_v27 }
 0x10a   :  { %1141 = vtanh.f32 %v442_v63  ;;  %v1441_v63 = vand.u32 127, %v353_v1 }
 0x10b   :  { %1143 = vtanh.f32 %v433_v6 }
 0x10c   :  { %1145 = vtanh.f32 %v443_v8  ;;  %v544_v0 = vadd.s32 4294967288, %v1441_v63  ;;  %v551_v2 = vadd.s32 4294967280, %v1441_v63  ;;  %v565_v6 = vadd.s32 4294967264, %v1441_v63 }
 0x10d   :  { %v1128_v61 = vpop.eup %1127  ;;  %1147 = vtanh.f32 %v434_v14  ;;  %v572_v9 = vadd.s32 4294967256, %v1441_v63  ;;  %v579_v1 = vadd.s32 4294967248, %v1441_v63 }
 0x10e   :  { %v477_v3 = vmul.f32 %v1128_v61, %v1408_v59  ;;  %v1130_v4 = vpop.eup %1129  ;;  %1149 = vtanh.f32 %v444_v18  ;;  %v547_v8 = vsub.s32 %v544_v0, %v1382_v5  ;;  %v568_v18 = vsub.s32 %v565_v6, %v1382_v5  ;;  %v1122_v0 = vld [vmem:[%s1528_s3 + $0x10] sm:$0xff]  }
 0x10f   :  { %v478_v11 = vmul.f32 %v1130_v4, %v1408_v59  ;;  %v1132_v12 = vpop.eup %1131  ;;  %1151 = vtanh.f32 %v435_v24 }
 0x110   :  { %501 = vadd.xlane.f32.xlu1 %v477_v3  ;;  %v1134_v13 = vpop.eup %1133  ;;  %v479_v21 = vmul.f32 %v1132_v12, %v1408_v59  ;;  %1153 = vtanh.f32 %v445_v25  ;;  %v558_v3 = vadd.s32 4294967272, %v1441_v63  ;;  %v586_v12 = vadd.s32 4294967240, %v1441_v63 }
 0x111   :  { %v469_v19 = vmul.f32 %v1134_v13, %v1408_v59  ;;  %v1136_v20 = vpop.eup %1135  ;;  %1155 = vtanh.f32 %v436_v33  ;;  %v542_v13 = vsub.s32 %v1441_v63, %v1382_v5  ;;  %v582_v25 = vsub.s32 %v579_v1, %v1382_v5 }
 0x112   :  { %v1138_v22 = vpop.eup %1137  ;;  %v470_v28 = vmul.f32 %v1136_v20, %v1408_v59  ;;  %1157 = vtanh.f32 %v437_v38  ;;  %v561_v15 = vsub.s32 %v558_v3, %v1382_v5  ;;  %v1125_v3 = vld [vmem:[%s1528_s3 + $0x18] sm:$0xff]  }
 0x113   :  { %485 = vadd.xlane.f32.xlu0 %v469_v19  ;;  %v1140_v29 = vpop.eup %1139  ;;  %v480_v30 = vmul.f32 %v1138_v22, %v1408_v59  ;;  %v575_v22 = vsub.s32 %v572_v9, %v1382_v5 }
 0x114   :  { %503 = vadd.xlane.f32.xlu1 %v478_v11  ;;  %v1142_v31 = vpop.eup %1141  ;;  %v471_v34 = vmul.f32 %v1140_v29, %v1408_v59  ;;  %v554_v11 = vsub.s32 %v551_v2, %v1382_v5  ;;  %v1124_v2 = vld [vmem:[%s1528_s3 + $0x30] sm:$0xff]  }
 0x115   :  { %v1144_v35 = vpop.eup %1143  ;;  %v481_v36 = vmul.f32 %v1142_v31, %v1408_v59 }
 0x116   :  { %v1146_v37 = vpop.eup %1145  ;;  %v472_v39 = vmul.f32 %v1144_v35, %v1408_v59 }
 0x117   :  { %487 = vadd.xlane.f32.xlu0 %v470_v28  ;;  %v1148_v40 = vpop.eup %1147  ;;  %v482_v41 = vmul.f32 %v1146_v37, %v1408_v59  ;;  %v589_v28 = vsub.s32 %v586_v12, %v1382_v5 }
 0x118   :  { %505 = vadd.xlane.f32.xlu1 %v479_v21  ;;  %v1150_v26 = vpop.eup %1149  ;;  %v473_v42 = vmul.f32 %v1148_v40, %v1408_v59 }
 0x119   :  { %v1152_v43 = vpop.eup %1151  ;;  %v483_v44 = vmul.f32 %v1150_v26, %v1408_v59 }
 0x11a   :  { %v1154_v45 = vpop.eup %1153  ;;  %v474_v27 = vmul.f32 %v1152_v43, %v1408_v59 }
 0x11b   :  { %489 = vadd.xlane.f32.xlu0 %v471_v34  ;;  %v1156_v46 = vpop.eup %1155  ;;  %v484_v47 = vmul.f32 %v1154_v45, %v1408_v59 }
 0x11c   :  { %507 = vadd.xlane.f32.xlu1 %v480_v30  ;;  %v475_v48 = vmul.f32 %v1156_v46, %v1408_v59  ;;  %v1158_v49 = vpop.eup %1157 }
 0x11d   :  { %v476_v50 = vmul.f32 %v1158_v49, %v1408_v59 }
 0x11f   :  { %491 = vadd.xlane.f32.xlu0 %v472_v39 }
 0x120   :  { %509 = vadd.xlane.f32.xlu1 %v481_v36 }
 0x123   :  { %493 = vadd.xlane.f32.xlu0 %v473_v42 }
 0x124   :  { %511 = vadd.xlane.f32.xlu1 %v482_v41 }
 0x127   :  { %495 = vadd.xlane.f32.xlu0 %v474_v27 }
 0x128   :  { %513 = vadd.xlane.f32.xlu1 %v483_v44 }
 0x12b   :  { %497 = vadd.xlane.f32.xlu0 %v475_v48 }
 0x12c   :  { %515 = vadd.xlane.f32.xlu1 %v484_v47 }
 0x12f   :  { %499 = vadd.xlane.f32.xlu0 %v476_v50 }
 0x145   :  { %521 = vperm.xlu0 %1118, %v519_v51  }
 0x19d   :  { %v502_v52 = vpop.xlane.xlu1 %501 }
 0x19e   :  { %v596_v19 = vrot.slane %v502_v52, %v542_v13 }
 0x1a0   :  { %v486_v54 = vpop.xlane.xlu0 %485 }
 0x1a1   :  { %v504_v53 = vpop.xlane.xlu1 %503  ;;  %v543_v30 = vrot.slane %v486_v54, %v542_v13 }
 0x1a2   :  { %v600_v14 = vrot.slane %v504_v53, %v547_v8 }
 0x1a4   :  { %v488_v56 = vpop.xlane.xlu0 %487  ;;  %v601_v31 = vsel %vm549_vm2, %v600_v14, %v596_v19 }
 0x1a5   :  { %v506_v55 = vpop.xlane.xlu1 %505  ;;  %v548_v20 = vrot.slane %v488_v56, %v547_v8  ;;  %v1120_v56 = vld [vmem:[%s1528_s3 + $0x8] sm:$0xff]  }
 0x1a6   :  { %v605_v17 = vrot.slane %v506_v55, %v554_v11  ;;  %v1119_v55 = vld [vmem:[%s1528_s3] sm:$0xff]  }
 0x1a7   :  { %v550_v38 = vsel %vm549_vm2, %v548_v20, %v543_v30  ;;  %1060 = vmatpush3.bf16.msra.mxu1 %v1119_v55 }
 0x1a8   :  { %v490_v58 = vpop.xlane.xlu0 %489  ;;  %v606_v34 = vsel %vm556_vm3, %v605_v17, %v601_v31  ;;  %1061 = vmatprep.subr.bf16.mxu1 %v1213_v10 }
 0x1a9   :  { %v508_v57 = vpop.xlane.xlu1 %507  ;;  %v555_v23 = vrot.slane %v490_v58, %v554_v11 }
 0x1aa   :  { %v610_v21 = vrot.slane %v508_v57, %v561_v15 }
 0x1ab   :  { %v557_v5 = vsel %vm556_vm3, %v555_v23, %v550_v38  ;;  %1062 = vmatpush3.bf16.msra.mxu1 %v1120_v56 }
 0x1ac   :  { %v492_v61 = vpop.xlane.xlu0 %491  ;;  %v611_v39 = vsel %vm563_vm4, %v610_v21, %v606_v34  ;;  %1063 = vmatprep.subr.bf16.mxu1 %v1213_v10 }
 0x1ad   :  { %v510_v60 = vpop.xlane.xlu1 %509  ;;  %v562_v32 = vrot.slane %v492_v61, %v561_v15 }
 0x1ae   :  { %v615_v24 = vrot.slane %v510_v60, %v568_v18 }
 0x1af   :  { %v564_v43 = vsel %vm563_vm4, %v562_v32, %v557_v5  ;;  %1064 = vmatpush3.bf16.msra.mxu1 %v1122_v0 }
 0x1b0   :  { %v494_v59 = vpop.xlane.xlu0 %493  ;;  %v616_v26 = vsel %vm570_vm5, %v615_v24, %v611_v39  ;;  %1065 = vmatprep.subr.bf16.mxu1 %v1213_v10 }
 0x1b1   :  { %v512_v62 = vpop.xlane.xlu1 %511  ;;  %v569_v35 = vrot.slane %v494_v59, %v568_v18  ;;  %v1123_v59 = vld [vmem:[%s1528_s3 + $0x28] sm:$0xff]  }
 0x1b2   :  { %v620_v33 = vrot.slane %v512_v62, %v575_v22 }
 0x1b3   :  { %v571_v27 = vsel %vm570_vm5, %v569_v35, %v564_v43  ;;  %1066 = vmatpush3.bf16.msra.mxu1 %v1125_v3 }
 0x1b4   :  { %v496_v4 = vpop.xlane.xlu0 %495  ;;  %v621_v44 = vsel %vm577_vm6, %v620_v33, %v616_v26 }
 0x1b5   :  { %v514_v7 = vpop.xlane.xlu1 %513  ;;  %v576_v40 = vrot.slane %v496_v4, %v575_v22  ;;  %v1126_v4 = vld [vmem:[%s1528_s3 + $0x38] sm:$0xff]  }
 0x1b6   :  { %v625_v36 = vrot.slane %v514_v7, %v582_v25 }
 0x1b7   :  { %v578_v47 = vsel %vm577_vm6, %v576_v40, %v571_v27 }
 0x1b8   :  { %v498_v16 = vpop.xlane.xlu0 %497  ;;  %v626_v46 = vsel %vm584_vm7, %v625_v36, %v621_v44 }
 0x1b9   :  { %v516_v29 = vpop.xlane.xlu1 %515  ;;  %v583_v42 = vrot.slane %v498_v16, %v582_v25 }
 0x1ba   :  { %v630_v41 = vrot.slane %v516_v29, %v589_v28 }
 0x1bb   :  { %v585_v49 = vsel %vm584_vm7, %v583_v42, %v578_v47 }
 0x1bc   :  { %v500_v37 = vpop.xlane.xlu0 %499  ;;  %v631_v48 = vsel %vm591_vm8, %v630_v41, %v626_v46 }
 0x1bd   :  { %v590_v45 = vrot.slane %v500_v37, %v589_v28 }
 0x1bf   :  { %v592_v51 = vsel %vm591_vm8, %v590_v45, %v585_v49 }
 0x1c0   :  { %v633_v52 = vsel %vm632_vm9, %v631_v48, %v592_v51 }
 0x1c4   :  { %v522_v50 = vpop.permute.xlu0 %521 }
 0x1c5   :  { %vm523_vm11 = vcmp.ge.s32.totalorder %v1441_v63, %v522_v50  ;;  %v1121_v63 = vld [vmem:[%s1528_s3 + $0x20] sm:$0xff]  }
 0x1c6   :  { %v635_v53 = vsel %vm523_vm11, -1e+30, %v633_v52  ;;  %1072 = vmatpush3.bf16.msra.mxu0 %v1121_v63 }
 0x1c7   :  { %v637_v54 = vsel %vm636_vm10, %v635_v53, -inf  ;;  %1073 = vmatprep.subr.bf16.mxu0 %v1213_v10 }
 0x1c8   :  { %638 = vmax.xlane.f32.xlu1 %v637_v54 }
 0x1ca   :  { %1074 = vmatpush3.bf16.msra.mxu0 %v1123_v59 }
 0x1cb   :  { %1075 = vmatprep.subr.bf16.mxu0 %v1213_v10 }
 0x1ce   :  { %1076 = vmatpush3.bf16.msra.mxu0 %v1124_v2 }
 0x1cf   :  { %1077 = vmatprep.subr.bf16.mxu0 %v1213_v10 }
 0x1d2   :  { %1078 = vmatpush3.bf16.msra.mxu0 %v1126_v4 }
 0x255   :  { %v639_v57 = vpop.xlane.xlu1 %638 }
 0x256   :  { %v640_v58 = vsub.f32 %v635_v53, %v639_v57 }
 0x258   :  { %v641_v60 = vmul.f32 1.442695, %v640_v58 }
 0x25a   :  { %1159 = vpow2.f32 %v641_v60 }
 0x264   :  { %v1160_v61 = vpop.eup %1159 }
 0x265   :  { %v643_v62 = vsel %vm636_vm10, %v1160_v61, 0.0 }
 0x266   :  { %644 = vadd.xlane.f32.xlu1 %v643_v62 }
 0x2f3   :  { %v645_v6 = vpop.xlane.xlu1 %644 }
 0x2f4   :  { %1161 = vrcp.f32 %v645_v6 }
 0x2fe   :  { %v1162_v7 = vpop.eup %1161 }
 0x2ff   :  { %v647_v8 = vmul.f32 %v1162_v7, %v1160_v61 }
 0x301   :  { %v649_v9 = vpack.c.bf16 %v647_v8, %v647_v8  ;;  %648 = vst.msk [vmem:[#allocation4] sm:$0x3] %vm636_vm10, %v647_v8 }
 0x303   :  { %1068 = vmatmul.mubr.msk.bf16.vlgmr.msra.gmra.mrb[16].mxu1 %vm682_vm12, %v649_v9  ;;  %v735_v11 = vshrl.u32 %v649_v9, 16 }
 0x305   :  { %1080 = vmatmul.mubr.msk.bf16.vlgmr.msra.gmra.mrb[4].mxu0 %vm682_vm12, %v735_v11 }
 0x306   :  { %1174 = shalt.err (!%p1171_p4)
}
 0x307   :  { %s1175_s27 = scalar_lea.hbm %s1534_s9, 32 }
 0x308   :  { %p1176_p5 = scmp.ne.s32.totalorder %s1534_s9, %s1175_s27  ;;  %p1179_p6 = scmp.lt.u32.totalorder %s1175_s27, %s1534_s9 }
 0x30a   :  { %p1181_p7 = pnand %p1179_p6, %p1176_p5 }
 0x30c   :  { %1184 = shalt.err (!%p1181_p7)
}
 0x30d   :  { %829 = dma.vmem_to_hbm [thread:$0]  %s827_s6, 32, %s1534_s9, [#allocation5]   ;;  %vm807_vm13 = vcmask 1040384  }
 0x30e   :  { %s1217_s11 = smov [#allocation2]  }
 0x30f   :  { %s816_s4 = sshll.u32 %s1217_s11, 4  ;;  %s817_s4 = int_to_ptr.vmem [resolvable:$true] %s816_s4 }
 0x310   :  { %s1185_s12 = scalar_lea.vmem %s817_s4, 32  ;;  %p1190_p9 = scmp.lt.s32.totalorder %s817_s4, %s817_s4 }
 0x311   :  { %p1186_p8 = scmp.ne.s32.totalorder %s817_s4, %s1185_s12  ;;  %p1191_p10 = scmp.lt.s32.totalorder %s1185_s12, %s1185_s12 }
 0x313   :  { %p1192_p11 = por %p1191_p10, %p1190_p9 }
 0x315   :  { %p1193_p12 = pnand %p1192_p11, %p1186_p8 }
 0x3d6   :  { %v720_v10 = vpop.f32.mrb[16].mxu1 }
 0x3d7   :  { %v1069_v1 = vpop.f32.mrb[17].mxu1 }
 0x3d8   :  { %v723_v12 = vpop.f32.mrb[18].mxu1  ;;  %v798_v13 = vpop.f32.mrb[4].mxu0 }
 0x3d9   :  { %v805_v14 = vrot.slane %v798_v13, 7  ;;  %v1070_v15 = vpop.f32.mrb[19].mxu1  ;;  %v1081_v16 = vpop.f32.mrb[5].mxu0 }
 0x3da   :  { %v801_v17 = vpop.f32.mrb[6].mxu0 }
 0x3db   :  { %v1082_v18 = vpop.f32.mrb[7].mxu0  ;;  %v808_v19 = vsel %vm807_vm13, %v720_v10, %v805_v14 }
 0x3dc   :  { %809 = vst [vmem:[#allocation2] sm:$0x3] %v808_v19 }
 0x3dd   :  { %1196 = shalt.err (!%p1193_p12)
}
 0x3de   :  { %s1197_s14 = scalar_lea.hbm %s1533_s8, 32 }
 0x3df   :  { %p1198_p13 = scmp.ne.s32.totalorder %s1533_s8, %s1197_s14  ;;  %p1201_p0 = scmp.lt.u32.totalorder %s1197_s14, %s1533_s8 }
 0x3e1   :  { %p1203_p1 = pnand %p1201_p0, %p1198_p13 }
 0x3e3   :  { %1206 = shalt.err (!%p1203_p1)
}
 0x3e4   :  { %819 = dma.vmem_to_hbm [thread:$0]  %s817_s4, 32, %s1533_s8, [#allocation3]  }
 0x3e5   :  { %1207 = dma.done.wait [#allocation3], 32  }
 0x3e6   :  { %1208 = vsyncadd [#allocation3], 4294967264 }
 0x3e7   :  { %1209 = dma.done.wait [#allocation5], 32  }
 0x3e8   :  { %1210 = vsyncadd [#allocation5], 4294967264 }
 0x3e9   :  { %836 = vsyncpa [#allocation3], 1 }
 0x3ea   :  { %837 = vsyncpa [#allocation5], 1 }

</bundles_post_ra>
